<compile_context>
chip_gen: v7x
topology: tpu7x:2x2x1
jax: 0.10.0
libtpu: 0.0.40
codegen_flags: <defaults>
</compile_context>

<pallas_src>
import functools

import jax
import jax.numpy as jnp
from jax import lax
from jax.experimental import pallas as pl
from jax.experimental.pallas import tpu as pltpu


def _round_up(x, m):
    return ((x + m - 1) // m) * m


def _is_multi_tensorcore():
    """Best-effort detection of 2-TensorCore-per-device chips (v7x-style)."""
    try:
        kind = jax.devices()[0].device_kind.lower()
    except Exception:  # pragma: no cover - defensive
        return False
    return any(tag in kind for tag in ("v7", "7x", "v4", "v5p"))


def _choose_block_b(B, multi_tc):
    """Batch-tile heuristic (mem/overhead-bound kernel -> big tiles)."""
    B16 = _round_up(max(B, 1), 16)          # bf16 packs 2 rows per sublane
    if B16 <= 1024:
        return B16                           # single tile; overhead-dominated
    if multi_tc:
        # Keep ~4 grid steps so the "parallel" axis shards across both TCs
        # and each core still has >=2 steps to pipeline.
        blk = _round_up(pl.cdiv(B16, 4), 256)
    else:
        # Single TC: extra grid steps are pure per-step overhead -> maximize.
        blk = 4096
    return min(blk, 4096, _round_up(B16, 256))


def _choose_chunk(block_b):
    """Inner row-chunk bounding the f32 intermediates inside the kernel."""
    if block_b > 512 and block_b % 256 == 0:
        return 512 if block_b % 512 == 0 else 256
    return block_b


def _vmem_limit_bytes(block_b, chunk, F_in, H1, H2):
    """Explicit VMEM accounting (+50% margin) for CompilerParams."""
    weights = 2 * (F_in * H1 * 2 + H1 * 4 + H1 * H2 * 2 + H2 * 4)  # dbl-buffered
    io = 2 * block_b * max(F_in, 128) * 2 + 2 * block_b * H2 * 2   # x/out bufs
    scratch = 2 * chunk * H1 * 4                                   # f32 h and y
    budget = weights + io + scratch
    return int(min(48 << 20, max(32 << 20, budget * 3 // 2 + (4 << 20))))


def _mlp_kernel(x_ref, w1_ref, b1_ref, w2_ref, b2_ref, o_ref, *, chunk):
    """Fused 2-layer MLP: relu(relu(x @ W1 + b1) @ W2 + b2), chunked over rows."""
    w1 = w1_ref[...]          # bf16 [F_in, H1], resident across grid steps
    b1 = b1_ref[...]          # f32  [1, H1]
    w2 = w2_ref[...]          # bf16 [H1, H2]
    b2 = b2_ref[...]          # f32  [1, H2]

    def compute_rows(r0, nrows):
        x = x_ref[pl.ds(r0, nrows), :]                           # bf16
        h = jnp.dot(x, w1, preferred_element_type=jnp.float32)   # MXU, f32 acc
        h = jnp.maximum(h + b1, 0.0)                             # f32 bias+ReLU
        y = jnp.dot(h.astype(w2.dtype), w2,
                    preferred_element_type=jnp.float32)
        y = jnp.maximum(y + b2, 0.0)
        o_ref[pl.ds(r0, nrows), :] = y.astype(o_ref.dtype)       # downcast @ store

    block_rows = o_ref.shape[0]
    n_chunks = block_rows // chunk
    if n_chunks <= 1:
        compute_rows(0, block_rows)
    else:
        def body(c, carry):
            compute_rows(pl.multiple_of(c * chunk, chunk), chunk)
            return carry
        lax.fori_loop(0, n_chunks, body, 0, unroll=(n_chunks <= 8))


@functools.partial(jax.jit, static_argnames=("block_b",))
def mlp_forward(x, w1, b1, w2, b2, *, block_b=None):
    """x: [B, F_in] -> [B, 256]   (equivalent to MLPModel.forward)."""
    # Keep the streamed operand in bf16 (avoid silently doubling HBM traffic).
    if x.dtype != jnp.bfloat16:
        x = x.astype(jnp.bfloat16)

    B, F_in = x.shape
    H1 = w1.shape[1]
    H2 = w2.shape[1]

    if block_b is None:
        block_b = _choose_block_b(B, _is_multi_tensorcore())
    chunk = _choose_chunk(block_b)

    grid_b = pl.cdiv(B, block_b)     # last partial block is masked by Pallas

    out_dtype = jnp.bfloat16
    flops = 2 * B * (F_in * H1 + H1 * H2)
    bytes_accessed = (
        B * F_in * 2
        + w1.size * w1.dtype.itemsize + b1.size * b1.dtype.itemsize
        + w2.size * w2.dtype.itemsize + b2.size * b2.dtype.itemsize
        + B * H2 * 2
    )

    return pl.pallas_call(
        functools.partial(_mlp_kernel, chunk=chunk),
        out_shape=jax.ShapeDtypeStruct((B, H2), out_dtype),
        grid_spec=pltpu.PrefetchScalarGridSpec(
            num_scalar_prefetch=0,
            grid=(grid_b,),
            in_specs=[
                # Streamed batch tile of the input.
                pl.BlockSpec((block_b, F_in), lambda i: (i, 0)),
                # Weights / biases: constant index_map -> DMA'd once, resident
                # in VMEM for every batch tile.
                pl.BlockSpec((F_in, H1), lambda i: (0, 0)),
                pl.BlockSpec((1, H1), lambda i: (0, 0)),
                pl.BlockSpec((H1, H2), lambda i: (0, 0)),
                pl.BlockSpec((1, H2), lambda i: (0, 0)),
            ],
            out_specs=pl.BlockSpec((block_b, H2), lambda i: (i, 0)),
        ),
        compiler_params=pltpu.CompilerParams(
            dimension_semantics=("parallel",),
            vmem_limit_bytes=_vmem_limit_bytes(block_b, chunk, F_in, H1, H2),
        ),
        cost_estimate=pl.CostEstimate(
            flops=flops, transcendentals=0, bytes_accessed=bytes_accessed),
    )(x, w1, b1, w2, b2)


def init_params(key, mlp_input, hidden=256):
    """PyTorch-style (uniform +/-1/sqrt(fan_in)) init; weights bf16, biases f32."""
    k1, k2, k3, k4 = jax.random.split(key, 4)
    bound1 = 1.0 / jnp.sqrt(mlp_input)
    bound2 = 1.0 / jnp.sqrt(hidden)
    w1 = jax.random.uniform(k1, (mlp_input, hidden), jnp.float32, -bound1, bound1)
    b1 = jax.random.uniform(k2, (1, hidden), jnp.float32, -bound1, bound1)
    w2 = jax.random.uniform(k3, (hidden, hidden), jnp.float32, -bound2, bound2)
    b2 = jax.random.uniform(k4, (1, hidden), jnp.float32, -bound2, bound2)
    return w1.astype(jnp.bfloat16), b1, w2.astype(jnp.bfloat16), b2


def _ref_forward(xb, w1b, b1f, w2b, b2f):
    """Plain-JAX reference in the same mixed precision as the kernel.
    NOTE: h is downcast to bf16 before the second matmul (matches the kernel);
    a pure-f32 PyTorch reference differs slightly -> 2e-2 tolerance."""
    h = jnp.maximum(
        jnp.dot(xb.astype(jnp.bfloat16), w1b,
                preferred_element_type=jnp.float32) + b1f, 0.0)
    return jnp.maximum(
        jnp.dot(h.astype(jnp.bfloat16), w2b,
                preferred_element_type=jnp.float32) + b2f, 0.0)


if __name__ == "__main__":
    # Small shapes consistent with the module: batch=8, mlp_input=32, hidden=256
    B, F_IN, HIDDEN = 8, 32, 256

    key = jax.random.PRNGKey(0)
    kx, kp = jax.random.split(key)
    w1, b1, w2, b2 = init_params(kp, F_IN, HIDDEN)
    x = jax.random.normal(kx, (B, F_IN), dtype=jnp.float32).astype(jnp.bfloat16)

    out = jax.block_until_ready(mlp_forward(x, w1, b1, w2, b2))
    ref = _ref_forward(x, w1, b1, w2, b2)
    assert out.shape == (B, HIDDEN)
    assert jnp.allclose(out.astype(jnp.float32), ref, atol=2e-2, rtol=2e-2)

    # Ragged batch: no wrapper-side pad, relies on masked partial block.
    x5 = jax.random.normal(jax.random.PRNGKey(1), (5, F_IN),
                           dtype=jnp.float32).astype(jnp.bfloat16)
    out5 = jax.block_until_ready(mlp_forward(x5, w1, b1, w2, b2))
    assert out5.shape == (5, HIDDEN)
    assert jnp.allclose(out5.astype(jnp.float32),
                        _ref_forward(x5, w1, b1, w2, b2), atol=2e-2, rtol=2e-2)

    # Multi-step grid path (forced small tile) and in-kernel chunked path
    # (forced oversized tile, partial block masked on writeback).
    x40 = jax.random.normal(jax.random.PRNGKey(2), (40, F_IN),
                            dtype=jnp.float32).astype(jnp.bfloat16)
    ref40 = _ref_forward(x40, w1, b1, w2, b2)
    out_grid = jax.block_until_ready(mlp_forward(x40, w1, b1, w2, b2, block_b=16))
    assert out_grid.shape == (40, HIDDEN)
    assert jnp.allclose(out_grid.astype(jnp.float32), ref40, atol=2e-2, rtol=2e-2)
    out_chunk = jax.block_until_ready(mlp_forward(x40, w1, b1, w2, b2, block_b=768))
    assert jnp.allclose(out_chunk.astype(jnp.float32), ref40, atol=2e-2, rtol=2e-2)

    print("KERNEL_OK")
</pallas_src>

<mosaic_0001>
module attributes {stable_mosaic.version = 11 : i64} {
  func.func @_mlp_kernel(%arg0: i32, %arg1: memref<16x32xbf16, #tpu.memory_space<vmem>>, %arg2: memref<32x256xbf16, #tpu.memory_space<vmem>>, %arg3: memref<1x256xf32, #tpu.memory_space<vmem>>, %arg4: memref<256x256xbf16, #tpu.memory_space<vmem>>, %arg5: memref<1x256xf32, #tpu.memory_space<vmem>>, %arg6: memref<16x256xbf16, #tpu.memory_space<vmem>>) attributes {dimension_semantics = [#tpu.dimension_semantics<parallel>], iteration_bounds = array<i64: 1>, scalar_prefetch = 0 : i64, scratch_operands = 0 : i64, tpu.core_type = #tpu.core_type<tc>, window_params = [{transform_indices = @transform_0, window_bounds = array<i64: 16, 32>}, {pipeline_mode = #tpu.pipeline_mode<synchronous>, transform_indices = @transform_1, window_bounds = array<i64: 32, 256>}, {pipeline_mode = #tpu.pipeline_mode<synchronous>, transform_indices = @transform_2, window_bounds = array<i64: 1, 256>}, {pipeline_mode = #tpu.pipeline_mode<synchronous>, transform_indices = @transform_3, window_bounds = array<i64: 256, 256>}, {pipeline_mode = #tpu.pipeline_mode<synchronous>, transform_indices = @transform_4, window_bounds = array<i64: 1, 256>}, {transform_indices = @transform_5, window_bounds = array<i64: 16, 256>}]} {
    %c0 = arith.constant 0 : index
    %c0_0 = arith.constant 0 : index
    %0 = vector.load %arg2[%c0, %c0_0] : memref<32x256xbf16, #tpu.memory_space<vmem>>, vector<32x256xbf16>
    %c0_1 = arith.constant 0 : index
    %c0_2 = arith.constant 0 : index
    %1 = vector.load %arg3[%c0_1, %c0_2] : memref<1x256xf32, #tpu.memory_space<vmem>>, vector<1x256xf32>
    %c0_3 = arith.constant 0 : index
    %c0_4 = arith.constant 0 : index
    %2 = vector.load %arg4[%c0_3, %c0_4] : memref<256x256xbf16, #tpu.memory_space<vmem>>, vector<256x256xbf16>
    %c0_5 = arith.constant 0 : index
    %c0_6 = arith.constant 0 : index
    %3 = vector.load %arg5[%c0_5, %c0_6] : memref<1x256xf32, #tpu.memory_space<vmem>>, vector<1x256xf32>
    %c0_7 = arith.constant 0 : index
    %c0_8 = arith.constant 0 : index
    %4 = vector.load %arg1[%c0_7, %c0_8] : memref<16x32xbf16, #tpu.memory_space<vmem>>, vector<16x32xbf16>
    %cst = arith.constant dense<0.000000e+00> : vector<16x256xf32>
    %5 = tpu.matmul %4, %0, %cst {dimension_numbers = #tpu.dot_dimension_numbers<[1], [0], [0], [1], [0, 0, 1, 1], [], []>} : vector<16x32xbf16>, vector<32x256xbf16>, vector<16x256xf32> -> vector<16x256xf32>
    %6 = vector.broadcast %1 : vector<1x256xf32> to vector<16x256xf32>
    %7 = arith.addf %5, %6 : vector<16x256xf32>
    %cst_9 = arith.constant 0.000000e+00 : f32
    %8 = vector.broadcast %cst_9 : f32 to vector<16x256xf32>
    %9 = arith.maximumf %7, %8 : vector<16x256xf32>
    %10 = arith.truncf %9 : vector<16x256xf32> to vector<16x256xbf16>
    %cst_10 = arith.constant dense<0.000000e+00> : vector<16x256xf32>
    %11 = tpu.matmul %10, %2, %cst_10 {dimension_numbers = #tpu.dot_dimension_numbers<[1], [0], [0], [1], [0, 0, 1, 1], [], []>} : vector<16x256xbf16>, vector<256x256xbf16>, vector<16x256xf32> -> vector<16x256xf32>
    %12 = vector.broadcast %3 : vector<1x256xf32> to vector<16x256xf32>
    %13 = arith.addf %11, %12 : vector<16x256xf32>
    %cst_11 = arith.constant 0.000000e+00 : f32
    %14 = vector.broadcast %cst_11 : f32 to vector<16x256xf32>
    %15 = arith.maximumf %13, %14 : vector<16x256xf32>
    %16 = arith.truncf %15 : vector<16x256xf32> to vector<16x256xbf16>
    %c0_12 = arith.constant 0 : index
    %c0_13 = arith.constant 0 : index
    %17 = vector.load %arg6[%c0_12, %c0_13] : memref<16x256xbf16, #tpu.memory_space<vmem>>, vector<16x256xbf16>
    tpu.vector_store %arg6[%c0_12, %c0_13], %16 {strides = array<i32>} : memref<16x256xbf16, #tpu.memory_space<vmem>>, vector<16x256xbf16>,
    return
  }
  func.func @transform_0(%arg0: i32) -> (i32, i32) {
    %c0_i32 = arith.constant 0 : i32
    %c0_i32_0 = arith.constant 0 : i32
    return %arg0, %c0_i32 : i32, i32
  }
  func.func @transform_1(%arg0: i32) -> (i32, i32) {
    %c0_i32 = arith.constant 0 : i32
    %c0_i32_0 = arith.constant 0 : i32
    %c0_i32_1 = arith.constant 0 : i32
    return %c0_i32, %c0_i32_0 : i32, i32
  }
  func.func @transform_2(%arg0: i32) -> (i32, i32) {
    %c0_i32 = arith.constant 0 : i32
    %c0_i32_0 = arith.constant 0 : i32
    %c0_i32_1 = arith.constant 0 : i32
    return %c0_i32, %c0_i32_0 : i32, i32
  }
  func.func @transform_3(%arg0: i32) -> (i32, i32) {
    %c0_i32 = arith.constant 0 : i32
    %c0_i32_0 = arith.constant 0 : i32
    %c0_i32_1 = arith.constant 0 : i32
    return %c0_i32, %c0_i32_0 : i32, i32
  }
  func.func @transform_4(%arg0: i32) -> (i32, i32) {
    %c0_i32 = arith.constant 0 : i32
    %c0_i32_0 = arith.constant 0 : i32
    %c0_i32_1 = arith.constant 0 : i32
    return %c0_i32, %c0_i32_0 : i32, i32
  }
  func.func @transform_5(%arg0: i32) -> (i32, i32) {
    %c0_i32 = arith.constant 0 : i32
    %c0_i32_0 = arith.constant 0 : i32
    return %arg0, %c0_i32 : i32, i32
  }
}

</mosaic_0001>

<bundles_post_ra>
// kernel: mlp_forward.1
= control target key start
LH: loop header
LB: loop body
LE: loop exit
PB: predicated region body
PF: predicated region fallthrough
CT: control target
= control target key end

     0   :  { %10 = vsyncpa [#allocation3], 0  ;;  %s744_s0 = inlined_call_operand.hbm [shape: bf16[8,32], index: 0, kind: input, shape index: {}]   ;;  %s745_s1 = inlined_call_operand.hbm [shape: bf16[32,256], index: 1, kind: input, shape index: {}]   ;;  %s746_s2 = inlined_call_operand.vmem [shape: f32[1,256], index: 2, kind: input, shape index: {}]   ;;  %s747_s3 = inlined_call_operand.hbm [shape: bf16[256,256], index: 3, kind: input, shape index: {}]   ;;  %s748_s4 = inlined_call_operand.vmem [shape: f32[1,256], index: 4, kind: input, shape index: {}]   ;;  %s749_s5 = inlined_call_operand.hbm [shape: bf16[8,256], index: 5, kind: output, shape index: {}]  }
   0x1   :  { %11 = vsyncpa [#allocation6], 0 }
   0x2   :  { %12 = vsyncpa [#allocation4], 0 }
   0x3   :  { %17 = vsyncadd [#allocation3], 64  ;;  %s642_s18 = smov [#allocation5]   ;;  %s548_s22 = scalar_lea.hbm %s745_s1, 512 }
   0x4   :  { %s30_s19 = sshll.u32 %s642_s18, 4  ;;  %p549_p0 = scmp.ne.s32.totalorder %s745_s1, %s548_s22  ;;  %s31_s19 = int_to_ptr.vmem [resolvable:$true] %s30_s19 }
   0x5   :  { %p552_p1 = scmp.lt.u32.totalorder %s548_s22, %s745_s1 }
   0x7   :  { %p554_p2 = pnand %p552_p1, %p549_p0 }
   0x9   :  { %557 = shalt.err (!%p554_p2)
}
   0xa   :  { %s558_s27 = scalar_lea.vmem %s31_s19, 512  ;;  %p563_p4 = scmp.lt.s32.totalorder %s31_s19, %s31_s19 }
   0xb   :  { %p559_p3 = scmp.ne.s32.totalorder %s31_s19, %s558_s27  ;;  %p564_p5 = scmp.lt.s32.totalorder %s558_s27, %s558_s27 }
   0xd   :  { %p565_p6 = por %p564_p5, %p563_p4 }
   0xf   :  { %p566_p7 = pnand %p565_p6, %p559_p3 }
  0x11   :  { %569 = shalt.err (!%p566_p7)
}
  0x12   :  { %s643_s28 = smov 128   ;;  %s644_s29 = smov 8  }
  0x13   :  { %36 = dma.hbm_to_vmem [thread:$0]  %s745_s1, 512, %s31_s19, [#allocation6], %s643_s28, %s643_s28, %s644_s29  }
  0x14   :  { %s645_s7 = smov [#allocation2]   ;;  %s570_s11 = scalar_lea.hbm %s744_s0, 64 }
  0x15   :  { %s18_s8 = sshll.u32 %s645_s7, 4  ;;  %p571_p8 = scmp.ne.s32.totalorder %s744_s0, %s570_s11  ;;  %s19_s8 = int_to_ptr.vmem [resolvable:$true] %s18_s8 }
  0x16   :  { %p574_p9 = scmp.lt.u32.totalorder %s570_s11, %s744_s0 }
  0x18   :  { %p576_p10 = pnand %p574_p9, %p571_p8 }
  0x1a   :  { %579 = shalt.err (!%p576_p10)
}
  0x1b   :  { %s580_s16 = scalar_lea.vmem %s19_s8, 64  ;;  %s584_s1 = scalar_lea.vmem %s19_s8, 128 }
  0x1c   :  { %p581_p11 = scmp.ne.s32.totalorder %s19_s8, %s580_s16  ;;  %p585_p12 = scmp.lt.s32.totalorder %s19_s8, %s19_s8 }
  0x1d   :  { %p586_p13 = scmp.lt.s32.totalorder %s584_s1, %s580_s16 }
  0x1f   :  { %p587_p0 = por %p586_p13, %p585_p12 }
  0x21   :  { %p588_p1 = pnand %p587_p0, %p581_p11 }
  0x23   :  { %591 = shalt.err (!%p588_p1)
}
  0x24   :  { %s646_s17 = smov 64   ;;  %s647_s18 = smov 4  }
  0x25   :  { %24 = dma.hbm_to_vmem [thread:$0]  %s744_s0, 64, %s19_s8, [#allocation3], %s646_s17, %s646_s17, %s647_s18  }
  0x26   :  { %s648_s21 = smov [#allocation7]   ;;  %s592_s25 = scalar_lea.hbm %s747_s3, 4096 }
  0x27   :  { %s44_s22 = sshll.u32 %s648_s21, 4  ;;  %p593_p2 = scmp.ne.s32.totalorder %s747_s3, %s592_s25  ;;  %s45_s22 = int_to_ptr.vmem [resolvable:$true] %s44_s22 }
  0x28   :  { %p596_p3 = scmp.lt.u32.totalorder %s592_s25, %s747_s3 }
  0x2a   :  { %p598_p4 = pnand %p596_p3, %p593_p2 }
  0x2c   :  { %601 = shalt.err (!%p598_p4)
}
  0x2d   :  { %s602_s7 = scalar_lea.vmem %s45_s22, 4096  ;;  %p607_p6 = scmp.lt.s32.totalorder %s45_s22, %s45_s22 }
  0x2e   :  { %p603_p5 = scmp.ne.s32.totalorder %s45_s22, %s602_s7  ;;  %p608_p7 = scmp.lt.s32.totalorder %s602_s7, %s602_s7 }
  0x30   :  { %p609_p8 = por %p608_p7, %p607_p6 }
  0x32   :  { %p610_p9 = pnand %p609_p8, %p603_p5 }
  0x34   :  { %613 = shalt.err (!%p610_p9)
}
  0x35   :  { %50 = dma.hbm_to_vmem [thread:$0]  %s747_s3, 4096, %s45_s22, [#allocation6], %s643_s28, %s643_s28, %s644_s29  }
  0x36   :  { %636 = dma.done.wait [#allocation3], 128  }
  0x37   :  { %637 = vsyncadd [#allocation3], 4294967168 }
  0x38   :  { %638 = dma.done.wait [#allocation6], 4608  }
  0x39   :  { %639 = vsyncadd [#allocation6], 4294962688  ;;  %v649_v0 = vmov 0   ;;  %v493_v1 = vld [vmem:[#allocation5 + $0x4] ss:$8 sps:$4 sm:$0xff]   ;;  %v499_v8 = vld [vmem:[#allocation2] sm:$0xff]   ;;  %v104_v38 = vlaneseq }
  0x3a   :  { %175 = vmatprep.mubr.bf16.mxu0 %v649_v0  ;;  %v495_v2 = vld [vmem:[#allocation5] ss:$8 sps:$4 sm:$0xff]   ;;  %143 = vmatprep.subr.bf16.mxu0 %v493_v1  ;;  %v496_v3 = vld [vmem:[#allocation5 + $0x14] ss:$8 sps:$4 sm:$0xff]   ;;  %v498_v4 = vld [vmem:[#allocation5 + $0x10] ss:$8 sps:$4 sm:$0xff]  }
  0x3b   :  { %144 = vmatpush1.bf16.msra.mxu0 %v495_v2  ;;  %v500_v5 = vld [vmem:[#allocation7 + $0x4] ss:$8 sps:$4 sm:$0xff]   ;;  %v502_v6 = vld [vmem:[#allocation7] ss:$8 sps:$4 sm:$0xff]   ;;  %v503_v7 = vld [vmem:[#allocation7 + $0x14] ss:$8 sps:$4 sm:$0xff]  }
  0x3c   :  { %145 = vmatprep.subr.bf16.mxu0 %v496_v3  ;;  %363 = vmatprep.subr.bf16.mxu1 %v500_v5  ;;  %vm139_vm0 = vcmask 261120   ;;  %v505_v9 = vld [vmem:[#allocation7 + $0x10] ss:$8 sps:$4 sm:$0xff]   ;;  %v506_v10 = vld [vmem:[#allocation7 + $0x24] ss:$8 sps:$4 sm:$0xff]   ;;  %v105_v39 = vshrl.u32 %v104_v38, 7 }
  0x3d   :  { %364 = vmatpush1.bf16.msra.mxu1 %v502_v6  ;;  %v508_v11 = vld [vmem:[#allocation7 + $0x20] ss:$8 sps:$4 sm:$0xff]   ;;  %v509_v12 = vld [vmem:[#allocation7 + $0x34] ss:$8 sps:$4 sm:$0xff]   ;;  %v511_v13 = vld [vmem:[#allocation7 + $0x30] ss:$8 sps:$4 sm:$0xff]  }
  0x3e   :  { %365 = vmatprep.subr.bf16.mxu1 %v503_v7  ;;  %v512_v14 = vld [vmem:[#allocation7 + $0x44] ss:$8 sps:$4 sm:$0xff]   ;;  %v514_v15 = vld [vmem:[#allocation7 + $0x40] ss:$8 sps:$4 sm:$0xff]   ;;  %v515_v16 = vld [vmem:[#allocation7 + $0x54] ss:$8 sps:$4 sm:$0xff]  }
  0x3f   :  { %146 = vmatpush1.bf16.msra.mxu0 %v498_v4  ;;  %v517_v17 = vld [vmem:[#allocation7 + $0x50] ss:$8 sps:$4 sm:$0xff]   ;;  %v518_v18 = vld [vmem:[#allocation7 + $0x64] ss:$8 sps:$4 sm:$0xff]   ;;  %v520_v19 = vld [vmem:[#allocation7 + $0x60] ss:$8 sps:$4 sm:$0xff]  }
  0x40   :  { %v521_v20 = vld [vmem:[#allocation7 + $0x74] ss:$8 sps:$4 sm:$0xff]   ;;  %v523_v21 = vld [vmem:[#allocation7 + $0x70] ss:$8 sps:$4 sm:$0xff]   ;;  %v524_v22 = vld [vmem:[#allocation7 + $0x84] ss:$8 sps:$4 sm:$0xff]  }
  0x41   :  { %366 = vmatpush1.bf16.msra.mxu1 %v505_v9  ;;  %v526_v23 = vld [vmem:[#allocation7 + $0x80] ss:$8 sps:$4 sm:$0xff]   ;;  %v527_v24 = vld [vmem:[#allocation7 + $0x94] ss:$8 sps:$4 sm:$0xff]   ;;  %v529_v25 = vld [vmem:[#allocation7 + $0x90] ss:$8 sps:$4 sm:$0xff]  }
  0x42   :  { %447 = vmatmul.mubr.msk.bf16.vlgmr.msra.gmra.mrb[0].mxu0 %vm139_vm0, %v499_v8  ;;  %367 = vmatprep.subr.bf16.mxu1 %v506_v10  ;;  %v530_v26 = vld [vmem:[#allocation7 + $0xa4] ss:$8 sps:$4 sm:$0xff]   ;;  %v532_v27 = vld [vmem:[#allocation7 + $0xa0] ss:$8 sps:$4 sm:$0xff]   ;;  %v533_v28 = vld [vmem:[#allocation7 + $0xb4] ss:$8 sps:$4 sm:$0xff]  }
  0x43   :  { %v535_v29 = vld [vmem:[#allocation7 + $0xb0] ss:$8 sps:$4 sm:$0xff]   ;;  %v536_v30 = vld [vmem:[#allocation7 + $0xc4] ss:$8 sps:$4 sm:$0xff]   ;;  %v538_v31 = vld [vmem:[#allocation7 + $0xc0] ss:$8 sps:$4 sm:$0xff]  }
  0x44   :  { %v539_v32 = vld [vmem:[#allocation7 + $0xd4] ss:$8 sps:$4 sm:$0xff]   ;;  %v541_v33 = vld [vmem:[#allocation7 + $0xd0] ss:$8 sps:$4 sm:$0xff]   ;;  %v542_v34 = vld [vmem:[#allocation7 + $0xe4] ss:$8 sps:$4 sm:$0xff]  }
  0x45   :  { %368 = vmatpush1.bf16.msra.mxu1 %v508_v11  ;;  %v544_v35 = vld [vmem:[#allocation7 + $0xe0] ss:$8 sps:$4 sm:$0xff]   ;;  %v545_v36 = vld [vmem:[#allocation7 + $0xf4] ss:$8 sps:$4 sm:$0xff]   ;;  %v547_v37 = vld [vmem:[#allocation7 + $0xf0] ss:$8 sps:$4 sm:$0xff]  }
  0x46   :  { %369 = vmatprep.subr.bf16.mxu1 %v509_v12  ;;  %v106_v40 = vsub.s32 0, %v105_v39  ;;  %v67_v41 = vld [vmem:[%s746_s2] sm:$0x3]  ;;  %v110_v42 = vsub.s32 1, %v105_v39 }
  0x47   :  { %v100_v59 = vld [vmem:[%s748_s4] sm:$0x3] }
  0x48   :  { %v107_v43 = vrot.slane %v67_v41, %v106_v40  ;;  %v111_v44 = vrot.slane %v67_v41, %v110_v42  ;;  %v196_v60 = vrot.slane %v100_v59, %v106_v40  ;;  %v200_v61 = vrot.slane %v100_v59, %v110_v42 }
  0x49   :  { %370 = vmatpush1.bf16.msra.mxu1 %v511_v13 }
  0x4a   :  { %371 = vmatprep.subr.bf16.mxu1 %v512_v14 }
  0x4d   :  { %372 = vmatpush1.bf16.msra.mxu1 %v514_v15 }
  0x4e   :  { %373 = vmatprep.subr.bf16.mxu1 %v515_v16 }
  0x51   :  { %374 = vmatpush1.bf16.msra.mxu1 %v517_v17 }
  0x52   :  { %375 = vmatprep.subr.bf16.mxu1 %v518_v18 }
  0x55   :  { %376 = vmatpush1.bf16.msra.mxu1 %v520_v19 }
  0x56   :  { %377 = vmatprep.subr.bf16.mxu1 %v521_v20 }
  0x59   :  { %378 = vmatpush1.bf16.msra.mxu1 %v523_v21 }
  0x5a   :  { %379 = vmatprep.subr.bf16.mxu1 %v524_v22 }
  0x5d   :  { %380 = vmatpush1.bf16.msra.mxu1 %v526_v23 }
  0x5e   :  { %381 = vmatprep.subr.bf16.mxu1 %v527_v24 }
  0x61   :  { %382 = vmatpush1.bf16.msra.mxu1 %v529_v25 }
  0x62   :  { %383 = vmatprep.subr.bf16.mxu1 %v530_v26 }
  0x65   :  { %384 = vmatpush1.bf16.msra.mxu1 %v532_v27 }
  0x66   :  { %385 = vmatprep.subr.bf16.mxu1 %v533_v28 }
  0x69   :  { %386 = vmatpush1.bf16.msra.mxu1 %v535_v29 }
  0x6a   :  { %387 = vmatprep.subr.bf16.mxu1 %v536_v30 }
  0x6d   :  { %388 = vmatpush1.bf16.msra.mxu1 %v538_v31 }
  0x6e   :  { %389 = vmatprep.subr.bf16.mxu1 %v539_v32 }
  0x71   :  { %390 = vmatpush1.bf16.msra.mxu1 %v541_v33 }
  0x72   :  { %391 = vmatprep.subr.bf16.mxu1 %v542_v34 }
  0x75   :  { %392 = vmatpush1.bf16.msra.mxu1 %v544_v35 }
  0x76   :  { %393 = vmatprep.subr.bf16.mxu1 %v545_v36 }
  0x79   :  { %394 = vmatpush1.bf16.msra.mxu1 %v547_v37 }
 0x115   :  { %v177_v45 = vpop.f32.mrb[0].mxu0 }
 0x116   :  { %v178_v46 = vadd.f32 %v177_v45, %v107_v43  ;;  %v179_v47 = vpop.f32.mrb[1].mxu0 }
 0x117   :  { %v180_v48 = vadd.f32 %v179_v47, %v111_v44  ;;  %v181_v49 = vpop.f32.mrb[2].mxu0 }
 0x118   :  { %v182_v50 = vadd.f32 %v181_v49, %v107_v43  ;;  %v183_v51 = vpop.f32.mrb[3].mxu0  ;;  %v186_v53 = vmax.f32 %v178_v46, 0.0 }
 0x119   :  { %v184_v52 = vadd.f32 %v183_v51, %v111_v44  ;;  %v187_v55 = vmax.f32 %v180_v48, 0.0 }
 0x11a   :  { %v188_v54 = vmax.f32 %v182_v50, 0.0 }
 0x11b   :  { %v189_v56 = vmax.f32 %v184_v52, 0.0 }
 0x11c   :  { %v190_v57 = vpack.c.bf16 %v188_v54, %v186_v53 }
 0x11d   :  { %v191_v58 = vpack.c.bf16 %v189_v56, %v187_v55 }
 0x11f   :  { %395 = vmatprep.mubr.bf16.mxu1 %v191_v58 }
 0x120   :  { %396 = vmatmul.mubr.bf16.vlgmr.msra.gmra.mrb[0].mxu1 %v190_v57 }
 0x1f3   :  { %v397_v62 = vpop.f32.mrb[0].mxu1 }
 0x1f4   :  { %v398_v63 = vadd.f32 %v397_v62, %v196_v60  ;;  %v399_v0 = vpop.f32.mrb[1].mxu1 }
 0x1f5   :  { %v400_v1 = vadd.f32 %v399_v0, %v200_v61  ;;  %v401_v2 = vpop.f32.mrb[2].mxu1 }
 0x1f6   :  { %v406_v3 = vmax.f32 %v398_v63, 0.0  ;;  %v402_v4 = vadd.f32 %v401_v2, %v196_v60  ;;  %v403_v5 = vpop.f32.mrb[3].mxu1 }
 0x1f7   :  { %v407_v6 = vmax.f32 %v400_v1, 0.0  ;;  %v404_v7 = vadd.f32 %v403_v5, %v200_v61 }
 0x1f8   :  { %v408_v8 = vmax.f32 %v402_v4, 0.0 }
 0x1f9   :  { %v482_v9 = vpack.c.bf16 %v407_v6, %v406_v3  ;;  %v409_v10 = vmax.f32 %v404_v7, 0.0 }
 0x1fb   :  { %422 = vst [vmem:[#allocation8] sm:$0xff] %v482_v9  ;;  %v483_v11 = vpack.c.bf16 %v409_v10, %v408_v8 }
 0x1fd   :  { %423 = vst [vmem:[#allocation8 + $0x8] sm:$0xff] %v483_v11 }
 0x1fe   :  { %428 = vsyncadd [#allocation4], 128  ;;  %s650_s4 = smov [#allocation8]  }
 0x1ff   :  { %s429_s11 = sshll.u32 %s650_s4, 4  ;;  %s430_s11 = int_to_ptr.vmem [resolvable:$true] %s429_s11 }
 0x200   :  { %s614_s12 = scalar_lea.vmem %s430_s11, 128  ;;  %s618_s13 = scalar_lea.vmem %s430_s11, 256 }
 0x201   :  { %p615_p10 = scmp.ne.s32.totalorder %s430_s11, %s614_s12  ;;  %p619_p11 = scmp.lt.s32.totalorder %s430_s11, %s430_s11 }
 0x202   :  { %p620_p12 = scmp.lt.s32.totalorder %s618_s13, %s614_s12 }
 0x204   :  { %p621_p13 = por %p620_p12, %p619_p11 }
 0x206   :  { %p622_p0 = pnand %p621_p13, %p615_p10 }
 0x208   :  { %625 = shalt.err (!%p622_p0)
}
 0x209   :  { %s626_s16 = scalar_lea.hbm %s749_s5, 128 }
 0x20a   :  { %p627_p1 = scmp.ne.s32.totalorder %s749_s5, %s626_s16  ;;  %p630_p2 = scmp.lt.u32.totalorder %s626_s16, %s749_s5 }
 0x20c   :  { %p632_p3 = pnand %p630_p2, %p627_p1 }
 0x20e   :  { %635 = shalt.err (!%p632_p3)
}
 0x20f   :  { %435 = dma.vmem_to_hbm [thread:$0]  %s430_s11, 128, %s749_s5, [#allocation4], %s643_s28, %s643_s28, %s644_s29  }
 0x210   :  { %640 = dma.done.wait [#allocation4], 256  }
 0x211   :  { %641 = vsyncadd [#allocation4], 4294967040 }
 0x212   :  { %439 = vsyncpa [#allocation3], 1 }
 0x213   :  { %440 = vsyncpa [#allocation6], 1 }
 0x214   :  { %441 = vsyncpa [#allocation4], 1 }

</bundles_post_ra>
